<compile_context>
chip_gen: v6e
topology: v6e:2x2x1
jax: 0.10.0
libtpu: 0.0.40
codegen_flags: <defaults>
</compile_context>

<pallas_src>
import math

import jax
import jax.numpy as jnp
from jax import lax
from jax.experimental import pallas as pl
from jax.experimental.pallas import tpu as pltpu

NEG_SLOPE = 0.01          # F.leaky_relu default negative_slope
LANE = 128                # TPU lane width
SUB = 8                   # TPU sublane width
MXU_DTYPE = jnp.bfloat16  # MXU input dtype (f32 accumulation everywhere)


def _leaky_relu(v):
    return jnp.where(v >= 0, v, NEG_SLOPE * v)


def _sigmoid(v):
    # tanh form: one EUP transcendental per element instead of exp + recip.
    return 0.5 * (jnp.tanh(0.5 * v) + 1.0)


def _hop(x, adj_mask, w_pack, b_lin, w_g, b_g, id_emb, d_in):
    """One GAT hop (all in VMEM / vregs):

       h     = leaky_relu( GraphGAT(x, adj) )
       x_hat = leaky_relu( x @ W_lin + b_lin ) + id_embedding
       out   = leaky_relu( h @ W_g + b_g + x_hat )

    w_pack = [W_conv | W_lin] packed column-wise -> single MXU pass over x.
    MXU inputs are bf16, accumulation and softmax stats are f32.
    """
    xm = x.astype(MXU_DTYPE)
    packed = jnp.dot(xm, w_pack.astype(MXU_DTYPE),
                     preferred_element_type=jnp.float32)
    hw = packed[:, :d_in]                 # x @ W_conv    (128-aligned slice)
    lin = packed[:, d_in:] + b_lin        # x @ W_lin + b_lin

    # --- GraphGAT (dense): gated attention, neighbor softmax, add-aggregate.
    # Contract on the feature dim of both operands (== hw @ hw.T) so no
    # materialized transpose is required.
    hwm = hw.astype(MXU_DTYPE)
    scores = lax.dot_general(hwm, hwm, (((1,), (1,)), ((), ())),
                             preferred_element_type=jnp.float32)
    gate = _sigmoid(scores)
    # gate in (0,1) so exp(gate) is bounded -> mask with 0/1 multiply instead
    # of -inf (same softmax result after normalization, NaN-safe).
    e = adj_mask * jnp.exp(gate)
    denom = jnp.maximum(jnp.sum(e, axis=-1, keepdims=True), 1e-12)
    alpha = e * pl.reciprocal(denom, approx=True)     # EUP reciprocal
    conv = jnp.dot(alpha.astype(MXU_DTYPE), hwm,
                   preferred_element_type=jnp.float32)
    h = _leaky_relu(conv)

    # --- linear_layer branch + id_embedding, g_layer branch, combine.
    x_hat = _leaky_relu(lin) + id_emb
    g = jnp.dot(h.astype(MXU_DTYPE), w_g.astype(MXU_DTYPE),
                preferred_element_type=jnp.float32) + b_g
    return _leaky_relu(g + x_hat)


def gat_fused_kernel(x0_ref, user_ref, umask_ref, adj_ref, id_ref,
                     w_umlp_ref, b_umlp_ref,
                     w_pack1_ref, b_lin1_ref, w_g1_ref, b_g1_ref,
                     w_pack2_ref, b_lin2_ref, w_g2_ref, b_g2_ref,
                     o_ref):
    fp = x0_ref.shape[1]       # padded dim_feat
    dp = id_ref.shape[1]       # padded dim_id

    # user_features -> tanh(user_MLP(user_features)); rows are selected with a
    # 0/1 user-row mask so no axis-0 concat / VMEM copy is needed.
    u = jnp.tanh(
        jnp.dot(user_ref[...].astype(MXU_DTYPE),
                w_umlp_ref[...].astype(MXU_DTYPE),
                preferred_element_type=jnp.float32)
        + b_umlp_ref[...]
    )
    x = x0_ref[...] + umask_ref[...] * u

    # x = F.normalize(x, dim=1)   (padded cols are zero so the norm is exact)
    ss = jnp.sum(x * x, axis=-1, keepdims=True)
    x = x * lax.rsqrt(jnp.maximum(ss, 1e-24))   # == x / max(||x||_2, 1e-12)

    adj_mask = adj_ref[...]
    id_emb = id_ref[...]

    # hop 1 and hop 2, intermediates never leave VMEM.
    x_1 = _hop(x, adj_mask, w_pack1_ref[...], b_lin1_ref[...],
               w_g1_ref[...], b_g1_ref[...], id_emb, fp)
    x_2 = _hop(x_1, adj_mask, w_pack2_ref[...], b_lin2_ref[...],
               w_g2_ref[...], b_g2_ref[...], id_emb, dp)

    # Final cat((x_1, x_2), dim=1): one full-tile, lane-dense (2*128 wide),
    # unmasked store.
    o_ref[...] = jnp.concatenate([x_1, x_2], axis=1)


# -----------------------------------------------------------------------------
# Wrapper: zero-pad to lane/sublane-dense shapes, call kernel, un-pad.
# -----------------------------------------------------------------------------
def _round_up(v, m):
    return ((v + m - 1) // m) * m


def _pad2(a, rows, cols):
    r, c = a.shape
    return jnp.pad(a, ((0, rows - r), (0, cols - c)))


def gat_forward(params, item_features, user_features, adj_mask,
                id_embedding_weight):
    num_item, dim_feat = item_features.shape
    num_user, user_dim = user_features.shape
    n = num_item + num_user
    dim_id = id_embedding_weight.shape[1]

    np_ = _round_up(n, SUB)
    fp = _round_up(dim_feat, LANE)
    up = _round_up(user_dim, LANE)
    dp = _round_up(dim_id, LANE)

    # Pre-laid-out node buffer: item rows filled, user/pad rows zero.
    x0 = jnp.zeros((np_, fp), jnp.float32).at[:num_item, :dim_feat].set(
        item_features)
    user_in = jnp.zeros((np_, up), jnp.float32).at[num_item:n, :user_dim].set(
        user_features)
    umask = jnp.zeros((np_, 1), jnp.float32).at[num_item:n, :].set(1.0)
    adj_p = _pad2(adj_mask, np_, np_)
    id_p = _pad2(id_embedding_weight, np_, dp)

    # Pack W_conv | W_lin column-wise per hop (one MXU pass over x), padded.
    w_umlp = _pad2(params["w_umlp"], up, fp)
    b_umlp = _pad2(params["b_umlp"], 1, fp)
    w_pack1 = jnp.concatenate([_pad2(params["w_conv1"], fp, fp),
                               _pad2(params["w_lin1"], fp, dp)], axis=1)
    b_lin1 = _pad2(params["b_lin1"], 1, dp)
    w_g1 = _pad2(params["w_g1"], fp, dp)
    b_g1 = _pad2(params["b_g1"], 1, dp)
    w_pack2 = jnp.concatenate([_pad2(params["w_conv2"], dp, dp),
                               _pad2(params["w_lin2"], dp, dp)], axis=1)
    b_lin2 = _pad2(params["b_lin2"], 1, dp)
    w_g2 = _pad2(params["w_g2"], dp, dp)
    b_g2 = _pad2(params["b_g2"], 1, dp)

    args = (x0, user_in, umask, adj_p, id_p,
            w_umlp, b_umlp,
            w_pack1, b_lin1, w_g1, b_g1,
            w_pack2, b_lin2, w_g2, b_g2)

    # Explicit scoped-VMEM budget sized from the resident buffers (+ headroom).
    in_bytes = sum(int(a.size) * a.dtype.itemsize for a in args)
    out_bytes = np_ * (2 * dp) * 4
    scratch_est = 8 * np_ * max(fp, 2 * dp) * 4 + 4 * np_ * np_ * 4
    vmem_limit = int(min(max(2 * (in_bytes + out_bytes + scratch_est),
                             8 << 20), 100 << 20))

    # Advisory cost estimate for XLA scheduling around the custom call.
    flops = (2 * np_ * up * fp
             + 2 * np_ * fp * (fp + dp) + 4 * np_ * np_ * fp
             + 2 * np_ * fp * dp
             + 2 * np_ * dp * (2 * dp) + 4 * np_ * np_ * dp
             + 2 * np_ * dp * dp)
    transcendentals = np_ * fp + 2 * (2 * np_ * np_ + np_)

    vmem_spec = pl.BlockSpec(memory_space=pltpu.MemorySpace.VMEM)
    out_p = pl.pallas_call(
        gat_fused_kernel,
        out_shape=jax.ShapeDtypeStruct((np_, 2 * dp), jnp.float32),
        in_specs=[vmem_spec] * len(args),
        out_specs=vmem_spec,
        compiler_params=pltpu.CompilerParams(vmem_limit_bytes=vmem_limit),
        cost_estimate=pl.CostEstimate(flops=int(flops),
                                      transcendentals=int(transcendentals),
                                      bytes_accessed=int(in_bytes + out_bytes)),
    )(*args)

    # Un-pad back to the module's [N, 2*dim_id] output layout.
    x1 = out_p[:n, :dim_id]
    x2 = out_p[:n, dp:dp + dim_id]
    return jnp.concatenate([x1, x2], axis=1)


gat_forward_jit = jax.jit(gat_forward)


# -----------------------------------------------------------------------------
# Pure-JAX reference (unpadded, f32) with identical semantics, for validation.
# -----------------------------------------------------------------------------
def gat_reference(params, item_features, user_features, adj_mask,
                  id_embedding_weight):
    u = jnp.tanh(user_features @ params["w_umlp"] + params["b_umlp"])
    x = jnp.concatenate([item_features, u], axis=0)
    x = x / jnp.maximum(jnp.linalg.norm(x, axis=1, keepdims=True), 1e-12)

    def hop(x, w_conv, w_lin, b_lin, w_g, b_g):
        hw = x @ w_conv
        gate = jax.nn.sigmoid(hw @ hw.T)
        e = adj_mask * jnp.exp(gate)
        alpha = e / jnp.maximum(jnp.sum(e, axis=-1, keepdims=True), 1e-12)
        h = _leaky_relu(alpha @ hw)
        x_hat = _leaky_relu(x @ w_lin + b_lin) + id_embedding_weight
        return _leaky_relu(h @ w_g + b_g + x_hat)

    x1 = hop(x, params["w_conv1"], params["w_lin1"], params["b_lin1"],
             params["w_g1"], params["b_g1"])
    x2 = hop(x1, params["w_conv2"], params["w_lin2"], params["b_lin2"],
             params["w_g2"], params["b_g2"])
    return jnp.concatenate([x1, x2], axis=1)


# -----------------------------------------------------------------------------
# Parameter init (deterministic, xavier_normal_ for weights as in the module)
# -----------------------------------------------------------------------------
def xavier_normal(key, fan_in, fan_out):
    std = math.sqrt(2.0 / (fan_in + fan_out))
    # stored already transposed: (in, out) so kernels do x @ W
    return std * jax.random.normal(key, (fan_in, fan_out), dtype=jnp.float32)


def linear_params(key, fan_in, fan_out, xavier=True):
    kw, kb = jax.random.split(key)
    if xavier:
        w = xavier_normal(kw, fan_in, fan_out)
    else:
        bound = 1.0 / math.sqrt(fan_in)
        w = jax.random.uniform(kw, (fan_in, fan_out), jnp.float32, -bound, bound)
    bound = 1.0 / math.sqrt(fan_in)
    b = jax.random.uniform(kb, (1, fan_out), jnp.float32, -bound, bound)
    return w, b


# -----------------------------------------------------------------------------
# Main
# -----------------------------------------------------------------------------
if __name__ == "__main__":
    key = jax.random.PRNGKey(0)
    keys = jax.random.split(key, 12)

    num_item, num_user = 8, 8
    n_nodes = num_item + num_user
    dim_feat = 32          # features.size(1)
    user_dim_feat = 16     # user_features.size(1)
    dim_id = 16
    # hop = 2 path; dim_latent = None -> conv_embed_1: GraphGAT(dim_feat, dim_feat)

    # raw features
    item_features = jax.random.normal(keys[0], (num_item, dim_feat), jnp.float32)
    user_features = jax.random.normal(keys[1], (num_user, user_dim_feat), jnp.float32)
    id_embedding_weight = 0.1 * jax.random.normal(
        keys[2], (n_nodes, dim_id), jnp.float32)

    # deterministic edge_index (user u <-> a few items), made dense + self loops
    src, dst = [], []
    for u in range(num_user):
        for k in range(3):
            item = (u + k) % num_item
            uid = num_item + u
            src += [item, uid]
            dst += [uid, item]
    adj = jnp.zeros((n_nodes, n_nodes), jnp.float32)
    adj = adj.at[jnp.array(dst), jnp.array(src)].set(1.0)
    adj = adj.at[jnp.arange(n_nodes), jnp.arange(n_nodes)].set(1.0)  # self loops

    # parameters
    params = {}
    params["w_umlp"], params["b_umlp"] = linear_params(
        keys[3], user_dim_feat, dim_feat, xavier=False)            # user_MLP
    params["w_conv1"] = xavier_normal(keys[4], dim_feat, dim_feat)  # GraphGAT.weight
    params["w_lin1"], params["b_lin1"] = linear_params(keys[5], dim_feat, dim_id)
    params["w_g1"], params["b_g1"] = linear_params(keys[6], dim_feat, dim_id)
    params["w_conv2"] = xavier_normal(keys[7], dim_id, dim_id)
    params["w_lin2"], params["b_lin2"] = linear_params(keys[8], dim_id, dim_id)
    params["w_g2"], params["b_g2"] = linear_params(keys[9], dim_id, dim_id)

    out = gat_forward_jit(params, item_features, user_features, adj,
                          id_embedding_weight)
    out = jax.block_until_ready(out)

    ref = gat_reference(params, item_features, user_features, adj,
                        id_embedding_weight)
    ref = jax.block_until_ready(ref)

    assert out.shape == (n_nodes, 2 * dim_id), out.shape
    assert bool(jnp.all(jnp.isfinite(out)))
    max_err = float(jnp.max(jnp.abs(out - ref)))
    assert max_err < 5e-2, f"max abs err vs reference too large: {max_err}"
    print("KERNEL_OK")
</pallas_src>

<mosaic_0001>
module attributes {stable_mosaic.version = 11 : i64} {
  func.func @gat_fused_kernel(%arg0: memref<16x128xf32, #tpu.memory_space<vmem>>, %arg1: memref<16x128xf32, #tpu.memory_space<vmem>>, %arg2: memref<16x1xf32, #tpu.memory_space<vmem>>, %arg3: memref<16x16xf32, #tpu.memory_space<vmem>>, %arg4: memref<16x128xf32, #tpu.memory_space<vmem>>, %arg5: memref<128x128xf32, #tpu.memory_space<vmem>>, %arg6: memref<1x128xf32, #tpu.memory_space<vmem>>, %arg7: memref<128x256xf32, #tpu.memory_space<vmem>>, %arg8: memref<1x128xf32, #tpu.memory_space<vmem>>, %arg9: memref<128x128xf32, #tpu.memory_space<vmem>>, %arg10: memref<1x128xf32, #tpu.memory_space<vmem>>, %arg11: memref<128x256xf32, #tpu.memory_space<vmem>>, %arg12: memref<1x128xf32, #tpu.memory_space<vmem>>, %arg13: memref<128x128xf32, #tpu.memory_space<vmem>>, %arg14: memref<1x128xf32, #tpu.memory_space<vmem>>, %arg15: memref<16x256xf32, #tpu.memory_space<vmem>>) attributes {dimension_semantics = [], scalar_prefetch = 0 : i64, scratch_operands = 0 : i64, tpu.core_type = #tpu.core_type<tc>} {
    %c0 = arith.constant 0 : index
    %c0_0 = arith.constant 0 : index
    %0 = vector.load %arg1[%c0, %c0_0] : memref<16x128xf32, #tpu.memory_space<vmem>>, vector<16x128xf32>
    %1 = arith.truncf %0 : vector<16x128xf32> to vector<16x128xbf16>
    %c0_1 = arith.constant 0 : index
    %c0_2 = arith.constant 0 : index
    %2 = vector.load %arg5[%c0_1, %c0_2] : memref<128x128xf32, #tpu.memory_space<vmem>>, vector<128x128xf32>
    %3 = arith.truncf %2 : vector<128x128xf32> to vector<128x128xbf16>
    %cst = arith.constant dense<0.000000e+00> : vector<16x128xf32>
    %4 = tpu.matmul %1, %3, %cst {dimension_numbers = #tpu.dot_dimension_numbers<[1], [0], [0], [1], [0, 0, 1, 1], [], []>} : vector<16x128xbf16>, vector<128x128xbf16>, vector<16x128xf32> -> vector<16x128xf32>
    %c0_3 = arith.constant 0 : index
    %c0_4 = arith.constant 0 : index
    %5 = vector.load %arg6[%c0_3, %c0_4] : memref<1x128xf32, #tpu.memory_space<vmem>>, vector<1x128xf32>
    %6 = vector.broadcast %5 : vector<1x128xf32> to vector<16x128xf32>
    %7 = arith.addf %4, %6 : vector<16x128xf32>
    %8 = math.tanh %7 : vector<16x128xf32>
    %c0_5 = arith.constant 0 : index
    %c0_6 = arith.constant 0 : index
    %9 = vector.load %arg0[%c0_5, %c0_6] : memref<16x128xf32, #tpu.memory_space<vmem>>, vector<16x128xf32>
    %c0_7 = arith.constant 0 : index
    %c0_8 = arith.constant 0 : index
    %10 = vector.load %arg2[%c0_7, %c0_8] : memref<16x1xf32, #tpu.memory_space<vmem>>, vector<16x1xf32>
    %11 = vector.broadcast %10 : vector<16x1xf32> to vector<16x128xf32>
    %12 = arith.mulf %11, %8 : vector<16x128xf32>
    %13 = arith.addf %9, %12 : vector<16x128xf32>
    %14 = arith.mulf %13, %13 : vector<16x128xf32>
    %cst_9 = arith.constant dense<0.000000e+00> : vector<16xf32>
    %15 = vector.multi_reduction <add>, %14, %cst_9 [1] : vector<16x128xf32> to vector<16xf32>
    %16 = vector.shape_cast %15 : vector<16xf32> to vector<16x1xf32>
    %cst_10 = arith.constant 1.000000e-24 : f32
    %17 = vector.broadcast %cst_10 : f32 to vector<16x1xf32>
    %18 = arith.maximumf %16, %17 : vector<16x1xf32>
    %19 = math.rsqrt %18 : vector<16x1xf32>
    %20 = vector.broadcast %19 : vector<16x1xf32> to vector<16x128xf32>
    %21 = arith.mulf %13, %20 : vector<16x128xf32>
    %c0_11 = arith.constant 0 : index
    %c0_12 = arith.constant 0 : index
    %22 = vector.load %arg3[%c0_11, %c0_12] : memref<16x16xf32, #tpu.memory_space<vmem>>, vector<16x16xf32>
    %c0_13 = arith.constant 0 : index
    %c0_14 = arith.constant 0 : index
    %23 = vector.load %arg4[%c0_13, %c0_14] : memref<16x128xf32, #tpu.memory_space<vmem>>, vector<16x128xf32>
    %c0_15 = arith.constant 0 : index
    %c0_16 = arith.constant 0 : index
    %24 = vector.load %arg7[%c0_15, %c0_16] : memref<128x256xf32, #tpu.memory_space<vmem>>, vector<128x256xf32>
    %c0_17 = arith.constant 0 : index
    %c0_18 = arith.constant 0 : index
    %25 = vector.load %arg8[%c0_17, %c0_18] : memref<1x128xf32, #tpu.memory_space<vmem>>, vector<1x128xf32>
    %c0_19 = arith.constant 0 : index
    %c0_20 = arith.constant 0 : index
    %26 = vector.load %arg9[%c0_19, %c0_20] : memref<128x128xf32, #tpu.memory_space<vmem>>, vector<128x128xf32>
    %c0_21 = arith.constant 0 : index
    %c0_22 = arith.constant 0 : index
    %27 = vector.load %arg10[%c0_21, %c0_22] : memref<1x128xf32, #tpu.memory_space<vmem>>, vector<1x128xf32>
    %28 = arith.truncf %21 : vector<16x128xf32> to vector<16x128xbf16>
    %29 = arith.truncf %24 : vector<128x256xf32> to vector<128x256xbf16>
    %cst_23 = arith.constant dense<0.000000e+00> : vector<16x256xf32>
    %30 = tpu.matmul %28, %29, %cst_23 {dimension_numbers = #tpu.dot_dimension_numbers<[1], [0], [0], [1], [0, 0, 1, 1], [], []>} : vector<16x128xbf16>, vector<128x256xbf16>, vector<16x256xf32> -> vector<16x256xf32>
    %31 = vector.extract_strided_slice %30 {offsets = [0, 0], sizes = [16, 128], strides = [1, 1]} : vector<16x256xf32> to vector<16x128xf32>
    %32 = vector.extract_strided_slice %30 {offsets = [0, 128], sizes = [16, 128], strides = [1, 1]} : vector<16x256xf32> to vector<16x128xf32>
    %33 = vector.broadcast %25 : vector<1x128xf32> to vector<16x128xf32>
    %34 = arith.addf %32, %33 : vector<16x128xf32>
    %35 = arith.truncf %31 : vector<16x128xf32> to vector<16x128xbf16>
    %cst_24 = arith.constant dense<0.000000e+00> : vector<16x16xf32>
    %36 = tpu.matmul %35, %35, %cst_24 {dimension_numbers = #tpu.dot_dimension_numbers<[1], [1], [0], [0], [0, 0, 1, 0], [], []>} : vector<16x128xbf16>, vector<16x128xbf16>, vector<16x16xf32> -> vector<16x16xf32>
    %cst_25 = arith.constant 5.000000e-01 : f32
    %37 = vector.broadcast %cst_25 : f32 to vector<16x16xf32>
    %38 = arith.mulf %37, %36 : vector<16x16xf32>
    %39 = math.tanh %38 : vector<16x16xf32>
    %cst_26 = arith.constant 1.000000e+00 : f32
    %40 = vector.broadcast %cst_26 : f32 to vector<16x16xf32>
    %41 = arith.addf %39, %40 : vector<16x16xf32>
    %cst_27 = arith.constant 5.000000e-01 : f32
    %42 = vector.broadcast %cst_27 : f32 to vector<16x16xf32>
    %43 = arith.mulf %42, %41 : vector<16x16xf32>
    %44 = math.exp %43 : vector<16x16xf32>
    %45 = arith.mulf %22, %44 : vector<16x16xf32>
    %cst_28 = arith.constant dense<0.000000e+00> : vector<16xf32>
    %46 = vector.multi_reduction <add>, %45, %cst_28 [1] : vector<16x16xf32> to vector<16xf32>
    %47 = vector.shape_cast %46 : vector<16xf32> to vector<16x1xf32>
    %cst_29 = arith.constant 9.99999996E-13 : f32
    %48 = vector.broadcast %cst_29 : f32 to vector<16x1xf32>
    %49 = arith.maximumf %47, %48 : vector<16x1xf32>
    %50 = tpu.reciprocal %49 {approx = true} : vector<16x1xf32> -> vector<16x1xf32>
    %51 = vector.broadcast %50 : vector<16x1xf32> to vector<16x16xf32>
    %52 = arith.mulf %45, %51 : vector<16x16xf32>
    %53 = arith.truncf %52 : vector<16x16xf32> to vector<16x16xbf16>
    %cst_30 = arith.constant dense<0.000000e+00> : vector<16x128xf32>
    %54 = tpu.matmul %53, %35, %cst_30 {dimension_numbers = #tpu.dot_dimension_numbers<[1], [0], [0], [1], [0, 0, 1, 1], [], []>} : vector<16x16xbf16>, vector<16x128xbf16>, vector<16x128xf32> -> vector<16x128xf32>
    %cst_31 = arith.constant 0.000000e+00 : f32
    %55 = vector.broadcast %cst_31 : f32 to vector<16x128xf32>
    %56 = arith.cmpf oge, %54, %55 : vector<16x128xf32>
    %cst_32 = arith.constant 0.00999999977 : f32
    %57 = vector.broadcast %cst_32 : f32 to vector<16x128xf32>
    %58 = arith.mulf %57, %54 : vector<16x128xf32>
    %59 = arith.select %56, %54, %58 : vector<16x128xi1>, vector<16x128xf32>
    %cst_33 = arith.constant 0.000000e+00 : f32
    %60 = vector.broadcast %cst_33 : f32 to vector<16x128xf32>
    %61 = arith.cmpf oge, %34, %60 : vector<16x128xf32>
    %cst_34 = arith.constant 0.00999999977 : f32
    %62 = vector.broadcast %cst_34 : f32 to vector<16x128xf32>
    %63 = arith.mulf %62, %34 : vector<16x128xf32>
    %64 = arith.select %61, %34, %63 : vector<16x128xi1>, vector<16x128xf32>
    %65 = arith.addf %64, %23 : vector<16x128xf32>
    %66 = arith.truncf %59 : vector<16x128xf32> to vector<16x128xbf16>
    %67 = arith.truncf %26 : vector<128x128xf32> to vector<128x128xbf16>
    %cst_35 = arith.constant dense<0.000000e+00> : vector<16x128xf32>
    %68 = tpu.matmul %66, %67, %cst_35 {dimension_numbers = #tpu.dot_dimension_numbers<[1], [0], [0], [1], [0, 0, 1, 1], [], []>} : vector<16x128xbf16>, vector<128x128xbf16>, vector<16x128xf32> -> vector<16x128xf32>
    %69 = vector.broadcast %27 : vector<1x128xf32> to vector<16x128xf32>
    %70 = arith.addf %68, %69 : vector<16x128xf32>
    %71 = arith.addf %70, %65 : vector<16x128xf32>
    %cst_36 = arith.constant 0.000000e+00 : f32
    %72 = vector.broadcast %cst_36 : f32 to vector<16x128xf32>
    %73 = arith.cmpf oge, %71, %72 : vector<16x128xf32>
    %cst_37 = arith.constant 0.00999999977 : f32
    %74 = vector.broadcast %cst_37 : f32 to vector<16x128xf32>
    %75 = arith.mulf %74, %71 : vector<16x128xf32>
    %76 = arith.select %73, %71, %75 : vector<16x128xi1>, vector<16x128xf32>
    %c0_38 = arith.constant 0 : index
    %c0_39 = arith.constant 0 : index
    %77 = vector.load %arg11[%c0_38, %c0_39] : memref<128x256xf32, #tpu.memory_space<vmem>>, vector<128x256xf32>
    %c0_40 = arith.constant 0 : index
    %c0_41 = arith.constant 0 : index
    %78 = vector.load %arg12[%c0_40, %c0_41] : memref<1x128xf32, #tpu.memory_space<vmem>>, vector<1x128xf32>
    %c0_42 = arith.constant 0 : index
    %c0_43 = arith.constant 0 : index
    %79 = vector.load %arg13[%c0_42, %c0_43] : memref<128x128xf32, #tpu.memory_space<vmem>>, vector<128x128xf32>
    %c0_44 = arith.constant 0 : index
    %c0_45 = arith.constant 0 : index
    %80 = vector.load %arg14[%c0_44, %c0_45] : memref<1x128xf32, #tpu.memory_space<vmem>>, vector<1x128xf32>
    %81 = arith.truncf %76 : vector<16x128xf32> to vector<16x128xbf16>
    %82 = arith.truncf %77 : vector<128x256xf32> to vector<128x256xbf16>
    %cst_46 = arith.constant dense<0.000000e+00> : vector<16x256xf32>
    %83 = tpu.matmul %81, %82, %cst_46 {dimension_numbers = #tpu.dot_dimension_numbers<[1], [0], [0], [1], [0, 0, 1, 1], [], []>} : vector<16x128xbf16>, vector<128x256xbf16>, vector<16x256xf32> -> vector<16x256xf32>
    %84 = vector.extract_strided_slice %83 {offsets = [0, 0], sizes = [16, 128], strides = [1, 1]} : vector<16x256xf32> to vector<16x128xf32>
    %85 = vector.extract_strided_slice %83 {offsets = [0, 128], sizes = [16, 128], strides = [1, 1]} : vector<16x256xf32> to vector<16x128xf32>
    %86 = vector.broadcast %78 : vector<1x128xf32> to vector<16x128xf32>
    %87 = arith.addf %85, %86 : vector<16x128xf32>
    %88 = arith.truncf %84 : vector<16x128xf32> to vector<16x128xbf16>
    %cst_47 = arith.constant dense<0.000000e+00> : vector<16x16xf32>
    %89 = tpu.matmul %88, %88, %cst_47 {dimension_numbers = #tpu.dot_dimension_numbers<[1], [1], [0], [0], [0, 0, 1, 0], [], []>} : vector<16x128xbf16>, vector<16x128xbf16>, vector<16x16xf32> -> vector<16x16xf32>
    %cst_48 = arith.constant 5.000000e-01 : f32
    %90 = vector.broadcast %cst_48 : f32 to vector<16x16xf32>
    %91 = arith.mulf %90, %89 : vector<16x16xf32>
    %92 = math.tanh %91 : vector<16x16xf32>
    %cst_49 = arith.constant 1.000000e+00 : f32
    %93 = vector.broadcast %cst_49 : f32 to vector<16x16xf32>
    %94 = arith.addf %92, %93 : vector<16x16xf32>
    %cst_50 = arith.constant 5.000000e-01 : f32
    %95 = vector.broadcast %cst_50 : f32 to vector<16x16xf32>
    %96 = arith.mulf %95, %94 : vector<16x16xf32>
    %97 = math.exp %96 : vector<16x16xf32>
    %98 = arith.mulf %22, %97 : vector<16x16xf32>
    %cst_51 = arith.constant dense<0.000000e+00> : vector<16xf32>
    %99 = vector.multi_reduction <add>, %98, %cst_51 [1] : vector<16x16xf32> to vector<16xf32>
    %100 = vector.shape_cast %99 : vector<16xf32> to vector<16x1xf32>
    %cst_52 = arith.constant 9.99999996E-13 : f32
    %101 = vector.broadcast %cst_52 : f32 to vector<16x1xf32>
    %102 = arith.maximumf %100, %101 : vector<16x1xf32>
    %103 = tpu.reciprocal %102 {approx = true} : vector<16x1xf32> -> vector<16x1xf32>
    %104 = vector.broadcast %103 : vector<16x1xf32> to vector<16x16xf32>
    %105 = arith.mulf %98, %104 : vector<16x16xf32>
    %106 = arith.truncf %105 : vector<16x16xf32> to vector<16x16xbf16>
    %cst_53 = arith.constant dense<0.000000e+00> : vector<16x128xf32>
    %107 = tpu.matmul %106, %88, %cst_53 {dimension_numbers = #tpu.dot_dimension_numbers<[1], [0], [0], [1], [0, 0, 1, 1], [], []>} : vector<16x16xbf16>, vector<16x128xbf16>, vector<16x128xf32> -> vector<16x128xf32>
    %cst_54 = arith.constant 0.000000e+00 : f32
    %108 = vector.broadcast %cst_54 : f32 to vector<16x128xf32>
    %109 = arith.cmpf oge, %107, %108 : vector<16x128xf32>
    %cst_55 = arith.constant 0.00999999977 : f32
    %110 = vector.broadcast %cst_55 : f32 to vector<16x128xf32>
    %111 = arith.mulf %110, %107 : vector<16x128xf32>
    %112 = arith.select %109, %107, %111 : vector<16x128xi1>, vector<16x128xf32>
    %cst_56 = arith.constant 0.000000e+00 : f32
    %113 = vector.broadcast %cst_56 : f32 to vector<16x128xf32>
    %114 = arith.cmpf oge, %87, %113 : vector<16x128xf32>
    %cst_57 = arith.constant 0.00999999977 : f32
    %115 = vector.broadcast %cst_57 : f32 to vector<16x128xf32>
    %116 = arith.mulf %115, %87 : vector<16x128xf32>
    %117 = arith.select %114, %87, %116 : vector<16x128xi1>, vector<16x128xf32>
    %118 = arith.addf %117, %23 : vector<16x128xf32>
    %119 = arith.truncf %112 : vector<16x128xf32> to vector<16x128xbf16>
    %120 = arith.truncf %79 : vector<128x128xf32> to vector<128x128xbf16>
    %cst_58 = arith.constant dense<0.000000e+00> : vector<16x128xf32>
    %121 = tpu.matmul %119, %120, %cst_58 {dimension_numbers = #tpu.dot_dimension_numbers<[1], [0], [0], [1], [0, 0, 1, 1], [], []>} : vector<16x128xbf16>, vector<128x128xbf16>, vector<16x128xf32> -> vector<16x128xf32>
    %122 = vector.broadcast %80 : vector<1x128xf32> to vector<16x128xf32>
    %123 = arith.addf %121, %122 : vector<16x128xf32>
    %124 = arith.addf %123, %118 : vector<16x128xf32>
    %cst_59 = arith.constant 0.000000e+00 : f32
    %125 = vector.broadcast %cst_59 : f32 to vector<16x128xf32>
    %126 = arith.cmpf oge, %124, %125 : vector<16x128xf32>
    %cst_60 = arith.constant 0.00999999977 : f32
    %127 = vector.broadcast %cst_60 : f32 to vector<16x128xf32>
    %128 = arith.mulf %127, %124 : vector<16x128xf32>
    %129 = arith.select %126, %124, %128 : vector<16x128xi1>, vector<16x128xf32>
    %130 = tpu.concatenate %76, %129 in 1 : vector<16x128xf32>, vector<16x128xf32> -> vector<16x256xf32>
    %c0_61 = arith.constant 0 : index
    %c0_62 = arith.constant 0 : index
    %131 = vector.load %arg15[%c0_61, %c0_62] : memref<16x256xf32, #tpu.memory_space<vmem>>, vector<16x256xf32>
    tpu.vector_store %arg15[%c0_61, %c0_62], %130 {strides = array<i32>} : memref<16x256xf32, #tpu.memory_space<vmem>>, vector<16x256xf32>,
    return
  }
}

</mosaic_0001>

<bundles_post_ra>
// kernel: gat_forward.1
= control target key start
LH: loop header
LB: loop body
LE: loop exit
PB: predicated region body
PF: predicated region fallthrough
CT: control target
= control target key end

     0   :  { %v951_v0 = vmov 0.0   ;;  %vm952_vm0 = vmmov 0   ;;  %v953_v6 = vmov 0   ;;  %vm336_vm1 = vcmask 130048   ;;  %s1511_s5 = inlined_call_operand.vmem [shape: f32[128,128], index: 5, kind: input, shape index: {}]   ;;  %s1512_s2 = inlined_call_operand.vmem [shape: f32[16,1], index: 2, kind: input, shape index: {}]   ;;  %s1513_s1 = inlined_call_operand.vmem [shape: f32[16,128], index: 1, kind: input, shape index: {}]   ;;  %s1514_s7 = inlined_call_operand.vmem [shape: f32[128,256], index: 7, kind: input, shape index: {}]   ;;  %s1515_s6 = inlined_call_operand.vmem [shape: f32[1,128], index: 6, kind: input, shape index: {}]   ;;  %s1516_s0 = inlined_call_operand.vmem [shape: f32[16,128], index: 0, kind: input, shape index: {}]   ;;  %s1517_s3 = inlined_call_operand.vmem [shape: f32[16,16], index: 3, kind: input, shape index: {}]   ;;  %s1518_s9 = inlined_call_operand.vmem [shape: f32[128,128], index: 9, kind: input, shape index: {}]   ;;  %s1519_s11 = inlined_call_operand.vmem [shape: f32[128,256], index: 11, kind: input, shape index: {}]   ;;  %s1520_s8 = inlined_call_operand.vmem [shape: f32[1,128], index: 8, kind: input, shape index: {}]   ;;  %s1521_s4 = inlined_call_operand.vmem [shape: f32[16,128], index: 4, kind: input, shape index: {}]   ;;  %s1522_s10 = inlined_call_operand.vmem [shape: f32[1,128], index: 10, kind: input, shape index: {}]   ;;  %s1523_s15 = inlined_call_operand.vmem [shape: f32[16,256], index: 15, kind: output, shape index: {}]   ;;  %s1524_s13 = inlined_call_operand.vmem [shape: f32[128,128], index: 13, kind: input, shape index: {}]   ;;  %s1525_s12 = inlined_call_operand.vmem [shape: f32[1,128], index: 12, kind: input, shape index: {}]   ;;  %s1526_s14 = inlined_call_operand.vmem [shape: f32[1,128], index: 14, kind: input, shape index: {}]  }
   0x1   :  { %831 = vmatprep.subr.bf16.mxu0 %v951_v0  ;;  %v68_v1 = vld [vmem:[%s1511_s5 + $0x70] sm:$0xff]  ;;  %v69_v2 = vld [vmem:[%s1511_s5 + $0x78] sm:$0xff]  ;;  %v66_v3 = vld [vmem:[%s1511_s5 + $0x60] sm:$0xff]  ;;  %847 = vmatprep.mubr.msk.bf16.mxu0 %vm952_vm0, %v951_v0 }
   0x2   :  { %v77_v4 = vpack.c.bf16 %v69_v2, %v68_v1  ;;  %v67_v5 = vld [vmem:[%s1511_s5 + $0x68] sm:$0xff]  ;;  %918 = vset.pattern.permute.xlu0 %v953_v6  ;;  %261 = vmatprep.mubr.bf16.mxu1 %v953_v6  ;;  %v64_v8 = vld [vmem:[%s1511_s5 + $0x50] sm:$0xff]  ;;  %v65_v9 = vld [vmem:[%s1511_s5 + $0x58] sm:$0xff] }
   0x3   :  { %v76_v7 = vpack.c.bf16 %v67_v5, %v66_v3  ;;  %v130_v10 = vld [vmem:[%s1512_s2] sm:$0xff]  ;;  %v75_v11 = vpack.c.bf16 %v65_v9, %v64_v8  ;;  %v63_v13 = vld [vmem:[%s1511_s5 + $0x48] sm:$0xff]  ;;  %v60_v16 = vld [vmem:[%s1511_s5 + $0x30] sm:$0xff] }
   0x4   :  { %832 = vmatpush3.bf16.msra.mxu0 %v77_v4  ;;  %134 = vperm.xlu0 %918, %v130_v10   ;;  %v62_v12 = vld [vmem:[%s1511_s5 + $0x40] sm:$0xff]  ;;  %v131_v14 = vld [vmem:[%s1512_s2 + $0x8] sm:$0xff]  ;;  %v61_v17 = vld [vmem:[%s1511_s5 + $0x38] sm:$0xff] }
   0x5   :  { %833 = vmatprep.subr.bf16.mxu0 %v951_v0  ;;  %v74_v15 = vpack.c.bf16 %v63_v13, %v62_v12  ;;  %v73_v18 = vpack.c.bf16 %v61_v17, %v60_v16  ;;  %v58_v19 = vld [vmem:[%s1511_s5 + $0x20] sm:$0xff]  ;;  %v59_v20 = vld [vmem:[%s1511_s5 + $0x28] sm:$0xff]  ;;  %v56_v22 = vld [vmem:[%s1511_s5 + $0x10] sm:$0xff] }
   0x6   :  { %v72_v21 = vpack.c.bf16 %v59_v20, %v58_v19  ;;  %v57_v23 = vld [vmem:[%s1511_s5 + $0x18] sm:$0xff]  ;;  %v54_v25 = vld [vmem:[%s1511_s5] sm:$0xff]  ;;  %v55_v26 = vld [vmem:[%s1511_s5 + $0x8] sm:$0xff] }
   0x7   :  { %v71_v24 = vpack.c.bf16 %v57_v23, %v56_v22  ;;  %v70_v27 = vpack.c.bf16 %v55_v26, %v54_v25  ;;  %v51_v28 = vld [vmem:[%s1513_s1] sm:$0xff]  ;;  %v52_v29 = vld [vmem:[%s1513_s1 + $0x8] sm:$0xff]  ;;  %v193_v32 = vld [vmem:[%s1514_s7 + $0xf8] sm:$0xff] }
   0x8   :  { %834 = vmatpush3.bf16.msra.mxu0 %v76_v7  ;;  %139 = vperm.xlu0 %918, %v131_v14   ;;  %v53_v30 = vpack.c.bf16 %v52_v29, %v51_v28  ;;  %v191_v31 = vld [vmem:[%s1514_s7 + $0xe8] sm:$0xff]  ;;  %v190_v33 = vld [vmem:[%s1514_s7 + $0xe0] sm:$0xff]  ;;  %v192_v35 = vld [vmem:[%s1514_s7 + $0xf0] sm:$0xff] }
   0x9   :  { %835 = vmatprep.subr.bf16.mxu0 %v951_v0  ;;  %v228_v34 = vpack.c.bf16 %v193_v32, %v191_v31  ;;  %v187_v36 = vld [vmem:[%s1514_s7 + $0xc8] sm:$0xff]  ;;  %v189_v37 = vld [vmem:[%s1514_s7 + $0xd8] sm:$0xff]  ;;  %v227_v38 = vpack.c.bf16 %v192_v35, %v190_v33  ;;  %v186_v40 = vld [vmem:[%s1514_s7 + $0xc0] sm:$0xff] }
   0xa   :  { %v226_v39 = vpack.c.bf16 %v189_v37, %v187_v36  ;;  %v188_v41 = vld [vmem:[%s1514_s7 + $0xd0] sm:$0xff]  ;;  %v789_v43 = vld [vmem:[%s1515_s6] ss:$0 sm:$0xff]  ;;  %v129_v57 = vld [vmem:[%s1516_s0 + $0x8] sm:$0xff] }
   0xb   :  { %229 = vmatprep.subr.bf16.mxu1 %v228_v34  ;;  %v225_v42 = vpack.c.bf16 %v188_v41, %v186_v40  ;;  %v128_v52 = vld [vmem:[%s1516_s0] sm:$0xff]  ;;  %v183_v62 = vld [vmem:[%s1514_s7 + $0xa8] sm:$0xff]  ;;  %v185_v63 = vld [vmem:[%s1514_s7 + $0xb8] sm:$0xff] }
   0xc   :  { %836 = vmatpush3.bf16.msra.mxu0 %v75_v11  ;;  %230 = vmatpush1.bf16.msra.mxu1 %v227_v38  ;;  %v224_v1 = vpack.c.bf16 %v185_v63, %v183_v62  ;;  %v182_v2 = vld [vmem:[%s1514_s7 + $0xa0] sm:$0xff]  ;;  %v184_v3 = vld [vmem:[%s1514_s7 + $0xb0] sm:$0xff]  ;;  %v179_v5 = vld [vmem:[%s1514_s7 + $0x88] sm:$0xff] }
   0xd   :  { %837 = vmatprep.subr.bf16.mxu0 %v951_v0  ;;  %231 = vmatprep.subr.bf16.mxu1 %v226_v39  ;;  %v223_v4 = vpack.c.bf16 %v184_v3, %v182_v2  ;;  %v181_v7 = vld [vmem:[%s1514_s7 + $0x98] sm:$0xff]  ;;  %v178_v9 = vld [vmem:[%s1514_s7 + $0x80] sm:$0xff]  ;;  %v180_v10 = vld [vmem:[%s1514_s7 + $0x90] sm:$0xff] }
   0xe   :  { %v222_v8 = vpack.c.bf16 %v181_v7, %v179_v5  ;;  %v221_v11 = vpack.c.bf16 %v180_v10, %v178_v9  ;;  %v175_v12 = vld [vmem:[%s1514_s7 + $0x68] sm:$0xff]  ;;  %v177_v13 = vld [vmem:[%s1514_s7 + $0x78] sm:$0xff]  ;;  %v176_v16 = vld [vmem:[%s1514_s7 + $0x70] sm:$0xff] }
   0xf   :  { %v220_v14 = vpack.c.bf16 %v177_v13, %v175_v12  ;;  %v171_v17 = vld [vmem:[%s1514_s7 + $0x48] sm:$0xff]  ;;  %v173_v19 = vld [vmem:[%s1514_s7 + $0x58] sm:$0xff]  ;;  %v170_v20 = vld [vmem:[%s1514_s7 + $0x40] sm:$0xff] }
  0x10   :  { %838 = vmatpush3.bf16.msra.mxu0 %v74_v15  ;;  %232 = vmatpush1.bf16.msra.mxu1 %v225_v42  ;;  %v174_v15 = vld [vmem:[%s1514_s7 + $0x60] sm:$0xff]  ;;  %v218_v22 = vpack.c.bf16 %v173_v19, %v171_v17  ;;  %v167_v23 = vld [vmem:[%s1514_s7 + $0x28] sm:$0xff]  ;;  %v168_v28 = vld [vmem:[%s1514_s7 + $0x30] sm:$0xff] }
  0x11   :  { %839 = vmatprep.subr.bf16.mxu0 %v951_v0  ;;  %233 = vmatprep.subr.bf16.mxu1 %v224_v1  ;;  %v163_v29 = vld [vmem:[%s1514_s7 + $0x8] sm:$0xff]  ;;  %v162_v33 = vld [vmem:[%s1514_s7] sm:$0xff]  ;;  %v164_v34 = vld [vmem:[%s1514_s7 + $0x10] sm:$0xff] }
  0x12   :  { %v213_v35 = vpack.c.bf16 %v164_v34, %v162_v33  ;;  %v1232_v1 = vld [vmem:[%s1517_s3] sm:$0xff]  ;;  %v209_v10 = vld [vmem:[%s1518_s9 + $0x70] sm:$0xff]  ;;  %v206_v17 = vld [vmem:[%s1518_s9 + $0x58] sm:$0xff] }
  0x13   :  { %v207_v12 = vld [vmem:[%s1518_s9 + $0x60] sm:$0xff] }
  0x14   :  { %840 = vmatpush3.bf16.msra.mxu0 %v73_v18  ;;  %234 = vmatpush1.bf16.msra.mxu1 %v223_v4  ;;  %v219_v18 = vpack.c.bf16 %v176_v16, %v174_v15  ;;  %v1238_v4 = vld [vmem:[%s1517_s3 + $0x8] sm:$0xff]  ;;  %v205_v16 = vld [vmem:[%s1518_s9 + $0x50] sm:$0xff]  ;;  %v203_v19 = vld [vmem:[%s1518_s9 + $0x40] sm:$0xff] }
  0x15   :  { %841 = vmatprep.subr.bf16.mxu0 %v951_v0  ;;  %235 = vmatprep.subr.bf16.mxu1 %v222_v8 }
  0x18   :  { %842 = vmatpush3.bf16.msra.mxu0 %v72_v21  ;;  %236 = vmatpush1.bf16.msra.mxu1 %v221_v11  ;;  %v172_v21 = vld [vmem:[%s1514_s7 + $0x50] sm:$0xff]  ;;  %v210_v11 = vld [vmem:[%s1518_s9 + $0x78] sm:$0xff] }
  0x19   :  { %843 = vmatprep.subr.bf16.mxu0 %v951_v0  ;;  %237 = vmatprep.subr.bf16.mxu1 %v220_v14  ;;  %v217_v25 = vpack.c.bf16 %v172_v21, %v170_v20  ;;  %v416_v13 = vpack.c.bf16 %v210_v11, %v209_v10  ;;  %v208_v14 = vld [vmem:[%s1518_s9 + $0x68] sm:$0xff]  ;;  %v484_v11 = vld [vmem:[%s1519_s11 + $0x60] sm:$0xff] }
  0x1a   :  { %v415_v15 = vpack.c.bf16 %v208_v14, %v207_v12  ;;  %v204_v20 = vld [vmem:[%s1518_s9 + $0x48] sm:$0xff]  ;;  %v486_v12 = vld [vmem:[%s1519_s11 + $0x70] sm:$0xff] }
  0x1b   :  { %v413_v21 = vpack.c.bf16 %v204_v20, %v203_v19 }
  0x1c   :  { %844 = vmatpush3.bf16.msra.mxu0 %v71_v24  ;;  %v169_v24 = vld [vmem:[%s1514_s7 + $0x38] sm:$0xff]  ;;  %238 = vmatpush1.bf16.msra.mxu1 %v219_v18  ;;  %v414_v18 = vpack.c.bf16 %v206_v17, %v205_v16 }
  0x1d   :  { %845 = vmatprep.subr.bf16.mxu0 %v951_v0  ;;  %239 = vmatprep.subr.bf16.mxu1 %v218_v22  ;;  %v216_v26 = vpack.c.bf16 %v169_v24, %v167_v23  ;;  %v201_v22 = vld [vmem:[%s1518_s9 + $0x30] sm:$0xff]  ;;  %v202_v23 = vld [vmem:[%s1518_s9 + $0x38] sm:$0xff] }
  0x1e   :  { %v412_v24 = vpack.c.bf16 %v202_v23, %v201_v22  ;;  %v481_v23 = vld [vmem:[%s1519_s11 + $0x48] sm:$0xff] }
  0x20   :  { %846 = vmatpush3.bf16.msra.mxu0 %v70_v27  ;;  %v166_v27 = vld [vmem:[%s1514_s7 + $0x20] sm:$0xff]  ;;  %240 = vmatpush1.bf16.msra.mxu1 %v217_v25 }
  0x21   :  { %863 = vmatprep.subr.bf16.mxu0 %v951_v0  ;;  %v215_v31 = vpack.c.bf16 %v168_v28, %v166_v27  ;;  %241 = vmatprep.subr.bf16.mxu1 %v216_v26  ;;  %v199_v25 = vld [vmem:[%s1518_s9 + $0x20] sm:$0xff]  ;;  %v200_v26 = vld [vmem:[%s1518_s9 + $0x28] sm:$0xff] }
  0x22   :  { %v411_v27 = vpack.c.bf16 %v200_v26, %v199_v25  ;;  %v480_v26 = vld [vmem:[%s1519_s11 + $0x40] sm:$0xff] }
  0x23   :  { %848 = vmatmul.mubr.bf16.vlgmr.msra.gmra.mxu0 %v53_v30  ;;  %v165_v30 = vld [vmem:[%s1514_s7 + $0x18] sm:$0xff] }
  0x24   :  { %879 = vmatprep.mubr.msk.bf16.mxu0 %vm952_vm0, %v951_v0  ;;  %v214_v32 = vpack.c.bf16 %v165_v30, %v163_v29  ;;  %242 = vmatpush1.bf16.msra.mxu1 %v215_v31 }
  0x25   :  { %864 = vmatpush3.bf16.msra.mxu0 %v416_v13  ;;  %v529_v13 = vpack.c.bf16 %v486_v12, %v484_v11 }
  0x26   :  { %243 = vmatprep.subr.bf16.mxu1 %v214_v32  ;;  %865 = vmatprep.subr.bf16.mxu0 %v951_v0 }
  0x28   :  { %244 = vmatpush1.bf16.msra.mxu1 %v213_v35 }
  0x29   :  { %851 = vmatprep.subr.bf16.mxu1 %v951_v0  ;;  %866 = vmatpush3.bf16.msra.mxu0 %v415_v15 }
  0x2a   :  { %867 = vmatprep.subr.bf16.mxu0 %v951_v0 }
  0x2d   :  { %868 = vmatpush3.bf16.msra.mxu0 %v414_v18 }
  0x2e   :  { %869 = vmatprep.subr.bf16.mxu0 %v951_v0 }
  0x31   :  { %870 = vmatpush3.bf16.msra.mxu0 %v413_v21 }
  0x32   :  { %871 = vmatprep.subr.bf16.mxu0 %v951_v0 }
  0x35   :  { %872 = vmatpush3.bf16.msra.mxu0 %v412_v24  ;;  %v483_v24 = vld [vmem:[%s1519_s11 + $0x58] sm:$0xff] }
  0x36   :  { %873 = vmatprep.subr.bf16.mxu0 %v951_v0  ;;  %v528_v25 = vpack.c.bf16 %v483_v24, %v481_v23 }
  0x39   :  { %874 = vmatpush3.bf16.msra.mxu0 %v411_v27  ;;  %v482_v27 = vld [vmem:[%s1519_s11 + $0x50] sm:$0xff] }
  0x3a   :  { %875 = vmatprep.subr.bf16.mxu0 %v951_v0 }
  0x7f   :  { %v135_v50 = vpop.permute.xlu0 %134 }
  0x83   :  { %v140_v56 = vpop.permute.xlu0 %139 }
  0xe3   :  { %v119_v44 = vpop.f32.mrf.mxu0 }
  0xe4   :  { %v120_v45 = vadd.f32 %v789_v43, %v119_v44 }
  0xe5   :  { %v849_v46 = vpop.f32.mrf.mxu0 }
  0xe6   :  { %919 = vtanh.f32 %v120_v45 }
  0xe7   :  { %v122_v47 = vpop.f32.mrf.mxu0 }
  0xe8   :  { %v123_v48 = vadd.f32 %v789_v43, %v122_v47 }
  0xe9   :  { %v850_v49 = vpop.f32.mrf.mxu0 }
  0xea   :  { %921 = vtanh.f32 %v123_v48 }
  0xf3   :  { %v920_v51 = vpop.eup %919 }
  0xf4   :  { %v142_v53 = vmul.f32 %v920_v51, %v135_v50 }
  0xf6   :  { %v1139_v54 = vadd.f32 %v142_v53, %v128_v52 }
  0xf7   :  { %v922_v55 = vpop.eup %921 }
  0xf8   :  { %v143_v58 = vmul.f32 %v922_v55, %v140_v56  ;;  %v146_v59 = vmul.f32 %v1139_v54, %v1139_v54 }
  0xfa   :  { %v145_v60 = vadd.f32 %v143_v58, %v129_v57  ;;  %148 = vadd.xlane.f32.xlu1 %v146_v59 }
  0xfc   :  { %v147_v61 = vmul.f32 %v145_v60, %v145_v60 }
  0xfe   :  { %150 = vadd.xlane.f32.xlu1 %v147_v61 }
 0x183   :  { %v149_v36 = vpop.xlane.xlu1 %148 }
 0x184   :  { %v152_v37 = vmax.f32 %v149_v36, 1e-24 }
 0x186   :  { %923 = vrsqrt.f32 %v152_v37  ;;  %v197_v37 = vld [vmem:[%s1518_s9 + $0x10] sm:$0xff] }
 0x187   :  { %v151_v38 = vpop.xlane.xlu1 %150 }
 0x188   :  { %v153_v39 = vmax.f32 %v151_v38, 1e-24  ;;  %v198_v38 = vld [vmem:[%s1518_s9 + $0x18] sm:$0xff] }
 0x18a   :  { %925 = vrsqrt.f32 %v153_v39  ;;  %v410_v39 = vpack.c.bf16 %v198_v38, %v197_v37  ;;  %v472_v38 = vld [vmem:[%s1519_s11] sm:$0xff] }
 0x18c   :  { %876 = vmatpush3.bf16.msra.mxu0 %v410_v39  ;;  %v474_v39 = vld [vmem:[%s1519_s11 + $0x10] sm:$0xff] }
 0x18d   :  { %877 = vmatprep.subr.bf16.mxu0 %v951_v0 }
 0x193   :  { %v924_v40 = vpop.eup %923 }
 0x194   :  { %v156_v42 = vmul.f32 %v924_v40, %v1139_v54  ;;  %v195_v40 = vld [vmem:[%s1518_s9] sm:$0xff] }
 0x197   :  { %v926_v41 = vpop.eup %925 }
 0x198   :  { %v157_v43 = vmul.f32 %v926_v41, %v145_v60 }
 0x19a   :  { %v212_v44 = vpack.c.bf16 %v157_v43, %v156_v42  ;;  %v501_v42 = vld [vmem:[%s1519_s11 + $0xe8] sm:$0xff]  ;;  %v503_v43 = vld [vmem:[%s1519_s11 + $0xf8] sm:$0xff] }
 0x19c   :  { %262 = vmatmul.mubr.bf16.vlgmr.msra.gmra.mxu1 %v212_v44  ;;  %v500_v44 = vld [vmem:[%s1519_s11 + $0xe0] sm:$0xff] }
 0x19d   :  { %853 = vmatprep.mubr.msk.bf16.mxu1 %vm952_vm0, %v951_v0 }
 0x25c   :  { %v263_v45 = vpop.f32.mrf.mxu1 }
 0x25e   :  { %v1222_v46 = vpop.f32.mrf.mxu1 }
 0x260   :  { %v267_v47 = vpop.f32.mrf.mxu1 }
 0x261   :  { %v280_v48 = vpack.c.bf16 %v267_v47, %v263_v45  ;;  %v538_v45 = vpack.c.bf16 %v503_v43, %v501_v42  ;;  %v502_v47 = vld [vmem:[%s1519_s11 + $0xf0] sm:$0xff] }
 0x262   :  { %v1227_v49 = vpop.f32.mrf.mxu1 }
 0x263   :  { %852 = vmatpush3.bf16.xpose.msra.mxu1 %v280_v48 }
 0x264   :  { %857 = vmatprep.subr.bf16.mxu1 %v951_v0 }
 0x26a   :  { %854 = vmatmul.mubr.bf16.vlgmr.msra.gmra.mxu1 %v280_v48 }
 0x26b   :  { %858 = vmatpush3.bf16.msra.mxu1 %v280_v48  ;;  %859 = vmatprep.mubr.msk.bf16.mxu1 %vm952_vm0, %v951_v0  ;;  %v497_v48 = vld [vmem:[%s1519_s11 + $0xc8] sm:$0xff] }
 0x26c   :  { %539 = vmatprep.subr.bf16.mxu1 %v538_v45 }
 0x32a   :  { %v315_v50 = vpop.f32.mrf.mxu1 }
 0x32b   :  { %v322_v51 = vmul.f32 0.5, %v315_v50  ;;  %v499_v50 = vld [vmem:[%s1519_s11 + $0xd8] sm:$0xff] }
 0x32c   :  { %v855_v52 = vpop.f32.mrf.mxu1 }
 0x32d   :  { %927 = vtanh.f32 %v322_v51  ;;  %v537_v51 = vpack.c.bf16 %v502_v47, %v500_v44  ;;  %v536_v52 = vpack.c.bf16 %v499_v50, %v497_v48  ;;  %v1408_v47 = vld [vmem:[%s1521_s4] sm:$0xff] }
 0x32e   :  { %v318_v53 = vpop.f32.mrf.mxu1  ;;  %v792_v48 = vld [vmem:[%s1522_s10] ss:$0 sm:$0xff] }
 0x32f   :  { %v323_v54 = vmul.f32 0.5, %v318_v53  ;;  %v496_v53 = vld [vmem:[%s1519_s11 + $0xc0] sm:$0xff] }
 0x330   :  { %v856_v55 = vpop.f32.mrf.mxu1 }
 0x331   :  { %929 = vtanh.f32 %v323_v54  ;;  %v498_v54 = vld [vmem:[%s1519_s11 + $0xd0] sm:$0xff]  ;;  %v493_v55 = vld [vmem:[%s1519_s11 + $0xa8] sm:$0xff] }
 0x33a   :  { %v928_v56 = vpop.eup %927 }
 0x33b   :  { %v326_v57 = vadd.f32 1.0, %v928_v56  ;;  %v495_v56 = vld [vmem:[%s1519_s11 + $0xb8] sm:$0xff] }
 0x33d   :  { %v328_v58 = vmul.f32 0.5, %v326_v57  ;;  %v535_v57 = vpack.c.bf16 %v498_v54, %v496_v53 }
 0x33e   :  { %v930_v59 = vpop.eup %929 }
 0x33f   :  { %v330_v60 = vmul.f32 1.442695, %v328_v58  ;;  %v327_v61 = vadd.f32 1.0, %v930_v59  ;;  %v534_v58 = vpack.c.bf16 %v495_v56, %v493_v55  ;;  %v492_v59 = vld [vmem:[%s1519_s11 + $0xa0] sm:$0xff] }
 0x341   :  { %931 = vpow2.f32 %v330_v60  ;;  %v329_v62 = vmul.f32 0.5, %v327_v61  ;;  %v494_v60 = vld [vmem:[%s1519_s11 + $0xb0] sm:$0xff]  ;;  %v489_v61 = vld [vmem:[%s1519_s11 + $0x88] sm:$0xff] }
 0x343   :  { %v332_v63 = vmul.f32 1.442695, %v329_v62  ;;  %v491_v62 = vld [vmem:[%s1519_s11 + $0x98] sm:$0xff] }
 0x345   :  { %933 = vpow2.f32 %v332_v63  ;;  %v533_v63 = vpack.c.bf16 %v494_v60, %v492_v59 }
 0x34e   :  { %v932_v2 = vpop.eup %931 }
 0x34f   :  { %v334_v3 = vmul.f32 %v932_v2, %v1232_v1  ;;  %v532_v2 = vpack.c.bf16 %v491_v62, %v489_v61 }
 0x351   :  { %v337_v5 = vsel %vm336_vm1, %v334_v3, 0.0 }
 0x352   :  { %v934_v7 = vpop.eup %933  ;;  %338 = vadd.xlane.f32.xlu0 %v337_v5  ;;  %v490_v5 = vld [vmem:[%s1519_s11 + $0x90] sm:$0xff] }
 0x353   :  { %v335_v8 = vmul.f32 %v934_v7, %v1238_v4  ;;  %v485_v7 = vld [vmem:[%s1519_s11 + $0x68] sm:$0xff] }
 0x355   :  { %v340_v9 = vsel %vm336_vm1, %v335_v8, 0.0 }
 0x356   :  { %341 = vadd.xlane.f32.xlu1 %v340_v9 }
 0x3db   :  { %v339_v28 = vpop.xlane.xlu0 %338 }
 0x3dc   :  { %v343_v29 = vmax.f32 %v339_v28, 1e-12  ;;  %v527_v28 = vpack.c.bf16 %v482_v27, %v480_v26 }
 0x3de   :  { %935 = vrcp.f32 %v343_v29  ;;  %v477_v29 = vld [vmem:[%s1519_s11 + $0x28] sm:$0xff] }
 0x3df   :  { %v342_v30 = vpop.xlane.xlu1 %341 }
 0x3e0   :  { %v344_v31 = vmax.f32 %v342_v30, 1e-12  ;;  %v479_v30 = vld [vmem:[%s1519_s11 + $0x38] sm:$0xff] }
 0x3e2   :  { %937 = vrcp.f32 %v344_v31  ;;  %v526_v31 = vpack.c.bf16 %v479_v30, %v477_v29  ;;  %v519_v30 = vld [vmem:[%s1524_s13 + $0x70] sm:$0xff] }
 0x3eb   :  { %v936_v32 = vpop.eup %935 }
 0x3ec   :  { %v347_v34 = vmul.f32 %v936_v32, %v334_v3  ;;  %v488_v3 = vld [vmem:[%s1519_s11 + $0x80] sm:$0xff] }
 0x3ed   :  { %v531_v9 = vpack.c.bf16 %v490_v5, %v488_v3  ;;  %v476_v32 = vld [vmem:[%s1519_s11 + $0x20] sm:$0xff] }
 0x3ef   :  { %v938_v33 = vpop.eup %937 }
 0x3f0   :  { %v348_v35 = vmul.f32 %v938_v33, %v335_v8  ;;  %v487_v8 = vld [vmem:[%s1519_s11 + $0x78] sm:$0xff]  ;;  %v478_v33 = vld [vmem:[%s1519_s11 + $0x30] sm:$0xff] }
 0x3f1   :  { %v530_v10 = vpack.c.bf16 %v487_v8, %v485_v7 }
 0x3f2   :  { %v349_v36 = vpack.c.bf16 %v348_v35, %v347_v34  ;;  %v525_v34 = vpack.c.bf16 %v478_v33, %v476_v32  ;;  %v473_v35 = vld [vmem:[%s1519_s11 + $0x8] sm:$0xff] }
 0x3f4   :  { %860 = vmatmul.mubr.msk.bf16.vlgmr.msra.gmra.mxu1 %vm336_vm1, %v349_v36  ;;  %v475_v36 = vld [vmem:[%s1519_s11 + $0x18] sm:$0xff] }
 0x3f5   :  { %571 = vmatprep.mubr.bf16.mxu1 %v953_v6  ;;  %v196_v6 = vld [vmem:[%s1518_s9 + $0x8] sm:$0xff]  ;;  %540 = vmatpush1.bf16.msra.mxu1 %v537_v51  ;;  %v524_v37 = vpack.c.bf16 %v475_v36, %v473_v35  ;;  %v516_v35 = vld [vmem:[%s1524_s13 + $0x58] sm:$0xff] }
 0x3f6   :  { %v409_v41 = vpack.c.bf16 %v196_v6, %v195_v40  ;;  %541 = vmatprep.subr.bf16.mxu1 %v536_v52  ;;  %v523_v40 = vpack.c.bf16 %v474_v39, %v472_v38  ;;  %v790_v6 = vld [vmem:[%s1520_s8] ss:$0 sm:$0xff]  ;;  %v514_v38 = vld [vmem:[%s1524_s13 + $0x48] sm:$0xff] }
 0x3f7   :  { %v279_v43 = vadd.f32 %v790_v6, %v1227_v49  ;;  %v1417_v49 = vld [vmem:[%s1521_s4 + $0x8] sm:$0xff] }
 0x3f8   :  { %878 = vmatpush3.bf16.msra.mxu0 %v409_v41  ;;  %v278_v41 = vadd.f32 %v790_v6, %v1222_v46  ;;  %v512_v6 = vld [vmem:[%s1524_s13 + $0x38] sm:$0xff] }
 0x3f9   :  { %895 = vmatprep.subr.bf16.mxu0 %v951_v0  ;;  %542 = vmatpush1.bf16.msra.mxu1 %v535_v57  ;;  %v403_v45 = vmul.f32 0.01, %v279_v43  ;;  %vm401_vm5 = vcmp.ge.f32.partialorder %v279_v43, 0.0 }
 0x3fa   :  { %543 = vmatprep.subr.bf16.mxu1 %v534_v58  ;;  %v402_v42 = vmul.f32 0.01, %v278_v41  ;;  %vm400_vm4 = vcmp.ge.f32.partialorder %v278_v41, 0.0 }
 0x3fb   :  { %v405_v52 = vsel %vm401_vm5, %v279_v43, %v403_v45  ;;  %v510_v43 = vld [vmem:[%s1524_s13 + $0x28] sm:$0xff] }
 0x3fc   :  { %v404_v44 = vsel %vm400_vm4, %v278_v41, %v402_v42  ;;  %v407_v57 = vadd.f32 %v405_v52, %v1417_v49  ;;  %v509_v42 = vld [vmem:[%s1524_s13 + $0x20] sm:$0xff] }
 0x3fd   :  { %544 = vmatpush1.bf16.msra.mxu1 %v533_v63  ;;  %v406_v51 = vadd.f32 %v404_v44, %v1408_v47  ;;  %v720_v44 = vpack.c.bf16 %v510_v43, %v509_v42 }
 0x3fe   :  { %545 = vmatprep.subr.bf16.mxu1 %v532_v2 }
 0x401   :  { %546 = vmatpush1.bf16.msra.mxu1 %v531_v9 }
 0x402   :  { %547 = vmatprep.subr.bf16.mxu1 %v530_v10 }
 0x405   :  { %548 = vmatpush1.bf16.msra.mxu1 %v529_v13 }
 0x406   :  { %549 = vmatprep.subr.bf16.mxu1 %v528_v25 }
 0x409   :  { %550 = vmatpush1.bf16.msra.mxu1 %v527_v28 }
 0x40a   :  { %551 = vmatprep.subr.bf16.mxu1 %v526_v31  ;;  %v520_v31 = vld [vmem:[%s1524_s13 + $0x78] sm:$0xff] }
 0x40b   :  { %v725_v32 = vpack.c.bf16 %v520_v31, %v519_v30 }
 0x40d   :  { %552 = vmatpush1.bf16.msra.mxu1 %v525_v34  ;;  %v515_v34 = vld [vmem:[%s1524_s13 + $0x50] sm:$0xff] }
 0x40e   :  { %553 = vmatprep.subr.bf16.mxu1 %v524_v37  ;;  %v723_v36 = vpack.c.bf16 %v516_v35, %v515_v34  ;;  %v513_v37 = vld [vmem:[%s1524_s13 + $0x40] sm:$0xff] }
 0x40f   :  { %v722_v39 = vpack.c.bf16 %v514_v38, %v513_v37 }
 0x411   :  { %554 = vmatpush1.bf16.msra.mxu1 %v523_v40  ;;  %v511_v40 = vld [vmem:[%s1524_s13 + $0x30] sm:$0xff] }
 0x412   :  { %883 = vmatprep.subr.bf16.mxu1 %v951_v0  ;;  %v721_v41 = vpack.c.bf16 %v512_v6, %v511_v40 }
 0x4b4   :  { %v387_v14 = vpop.f32.mrf.mxu1 }
 0x4b5   :  { %v396_v16 = vmul.f32 0.01, %v387_v14  ;;  %vm394_vm2 = vcmp.ge.f32.partialorder %v387_v14, 0.0 }
 0x4b6   :  { %v861_v15 = vpop.f32.mrf.mxu1 }
 0x4b7   :  { %v398_v20 = vsel %vm394_vm2, %v387_v14, %v396_v16 }
 0x4b8   :  { %v390_v17 = vpop.f32.mrf.mxu1 }
 0x4b9   :  { %vm395_vm3 = vcmp.ge.f32.partialorder %v390_v17, 0.0  ;;  %v397_v18 = vmul.f32 0.01, %v390_v17 }
 0x4ba   :  { %v862_v19 = vpop.f32.mrf.mxu1 }
 0x4bb   :  { %v399_v21 = vsel %vm395_vm3, %v390_v17, %v397_v18 }
 0x4bc   :  { %v408_v22 = vpack.c.bf16 %v399_v21, %v398_v20 }
 0x4be   :  { %880 = vmatmul.mubr.bf16.vlgmr.msra.gmra.mxu0 %v408_v22 }
 0x4bf   :  { %911 = vmatprep.mubr.msk.bf16.mxu0 %vm952_vm0, %v951_v0  ;;  %896 = vmatpush3.bf16.msra.mxu0 %v725_v32 }
 0x4c0   :  { %897 = vmatprep.subr.bf16.mxu0 %v951_v0 }
 0x57e   :  { %v457_v50 = vpop.f32.mrf.mxu0 }
 0x57f   :  { %v458_v46 = vadd.f32 %v792_v48, %v457_v50 }
 0x580   :  { %v881_v53 = vpop.f32.mrf.mxu0 }
 0x581   :  { %v464_v54 = vadd.f32 %v458_v46, %v406_v51 }
 0x582   :  { %v460_v55 = vpop.f32.mrf.mxu0 }
 0x583   :  { %vm466_vm6 = vcmp.ge.f32.partialorder %v464_v54, 0.0  ;;  %v468_v56 = vmul.f32 0.01, %v464_v54  ;;  %v461_v58 = vadd.f32 %v792_v48, %v460_v55 }
 0x584   :  { %v882_v59 = vpop.f32.mrf.mxu0 }
 0x585   :  { %v470_v60 = vsel %vm466_vm6, %v464_v54, %v468_v56  ;;  %v465_v61 = vadd.f32 %v461_v58, %v407_v57  ;;  %v507_v56 = vld [vmem:[%s1524_s13 + $0x10] sm:$0xff]  ;;  %v508_v57 = vld [vmem:[%s1524_s13 + $0x18] sm:$0xff]  ;;  %v505_v59 = vld [vmem:[%s1524_s13] sm:$0xff] }
 0x586   :  { %781 = vst [vmem:[%s1523_s15] sm:$0xff] %v470_v60  ;;  %v719_v58 = vpack.c.bf16 %v508_v57, %v507_v56 }
 0x587   :  { %vm467_vm7 = vcmp.ge.f32.partialorder %v465_v61, 0.0  ;;  %v469_v62 = vmul.f32 0.01, %v465_v61 }
 0x589   :  { %v471_v63 = vsel %vm467_vm7, %v465_v61, %v469_v62 }
 0x58a   :  { %783 = vst [vmem:[%s1523_s15 + $0x10] sm:$0xff] %v471_v63  ;;  %v522_v2 = vpack.c.bf16 %v471_v63, %v470_v60  ;;  %v506_v60 = vld [vmem:[%s1524_s13 + $0x8] sm:$0xff] }
 0x58b   :  { %v718_v61 = vpack.c.bf16 %v506_v60, %v505_v59 }
 0x58c   :  { %572 = vmatmul.mubr.bf16.vlgmr.msra.gmra.mxu1 %v522_v2 }
 0x58d   :  { %885 = vmatprep.mubr.msk.bf16.mxu1 %vm952_vm0, %v951_v0 }
 0x64c   :  { %v573_v3 = vpop.f32.mrf.mxu1 }
 0x64e   :  { %v1428_v5 = vpop.f32.mrf.mxu1 }
 0x650   :  { %v577_v7 = vpop.f32.mrf.mxu1 }
 0x651   :  { %v590_v8 = vpack.c.bf16 %v577_v7, %v573_v3 }
 0x652   :  { %v1433_v9 = vpop.f32.mrf.mxu1 }
 0x653   :  { %884 = vmatpush3.bf16.xpose.msra.mxu1 %v590_v8 }
 0x654   :  { %889 = vmatprep.subr.bf16.mxu1 %v951_v0 }
 0x65a   :  { %886 = vmatmul.mubr.bf16.vlgmr.msra.gmra.mxu1 %v590_v8 }
 0x65b   :  { %890 = vmatpush3.bf16.msra.mxu1 %v590_v8  ;;  %891 = vmatprep.mubr.msk.bf16.mxu1 %vm952_vm0, %v951_v0 }
 0x71a   :  { %v625_v10 = vpop.f32.mrf.mxu1 }
 0x71b   :  { %v632_v11 = vmul.f32 0.5, %v625_v10 }
 0x71c   :  { %v887_v12 = vpop.f32.mrf.mxu1 }
 0x71d   :  { %939 = vtanh.f32 %v632_v11  ;;  %v793_v12 = vld [vmem:[%s1525_s12] ss:$0 sm:$0xff] }
 0x71e   :  { %v628_v13 = vpop.f32.mrf.mxu1 }
 0x71f   :  { %v633_v14 = vmul.f32 0.5, %v628_v13  ;;  %v588_v13 = vadd.f32 %v793_v12, %v1428_v5 }
 0x720   :  { %v888_v15 = vpop.f32.mrf.mxu1 }
 0x721   :  { %941 = vtanh.f32 %v633_v14  ;;  %v711_v14 = vmul.f32 0.01, %v588_v13  ;;  %v589_v15 = vadd.f32 %v793_v12, %v1433_v9  ;;  %vm709_vm10 = vcmp.ge.f32.partialorder %v588_v13, 0.0 }
 0x723   :  { %vm710_vm11 = vcmp.ge.f32.partialorder %v589_v15, 0.0 }
 0x72a   :  { %v940_v16 = vpop.eup %939 }
 0x72b   :  { %v636_v17 = vadd.f32 1.0, %v940_v16  ;;  %v713_v16 = vsel %vm709_vm10, %v588_v13, %v711_v14 }
 0x72d   :  { %v638_v18 = vmul.f32 0.5, %v636_v17  ;;  %v712_v17 = vmul.f32 0.01, %v589_v15 }
 0x72e   :  { %v942_v19 = vpop.eup %941 }
 0x72f   :  { %v640_v20 = vmul.f32 1.442695, %v638_v18  ;;  %v637_v21 = vadd.f32 1.0, %v942_v19  ;;  %v795_v18 = vld [vmem:[%s1526_s14] ss:$0 sm:$0xff] }
 0x731   :  { %943 = vpow2.f32 %v640_v20  ;;  %v639_v22 = vmul.f32 0.5, %v637_v21  ;;  %v715_v20 = vadd.f32 %v713_v16, %v1408_v47 }
 0x733   :  { %v642_v23 = vmul.f32 1.442695, %v639_v22  ;;  %v714_v22 = vsel %vm710_vm11, %v589_v15, %v712_v17 }
 0x734   :  { %v716_v9 = vadd.f32 %v714_v22, %v1417_v49 }
 0x735   :  { %945 = vpow2.f32 %v642_v23 }
 0x73e   :  { %v944_v24 = vpop.eup %943 }
 0x73f   :  { %v644_v25 = vmul.f32 %v944_v24, %v1232_v1  ;;  %v517_v1 = vld [vmem:[%s1524_s13 + $0x60] sm:$0xff] }
 0x741   :  { %v646_v26 = vsel %vm336_vm1, %v644_v25, 0.0 }
 0x742   :  { %v946_v27 = vpop.eup %945  ;;  %647 = vadd.xlane.f32.xlu1 %v646_v26 }
 0x743   :  { %v645_v28 = vmul.f32 %v946_v27, %v1238_v4  ;;  %v518_v4 = vld [vmem:[%s1524_s13 + $0x68] sm:$0xff] }
 0x744   :  { %v724_v33 = vpack.c.bf16 %v518_v4, %v517_v1 }
 0x745   :  { %v649_v29 = vsel %vm336_vm1, %v645_v28, 0.0 }
 0x746   :  { %650 = vadd.xlane.f32.xlu1 %v649_v29  ;;  %898 = vmatpush3.bf16.msra.mxu0 %v724_v33 }
 0x747   :  { %899 = vmatprep.subr.bf16.mxu0 %v951_v0 }
 0x74a   :  { %900 = vmatpush3.bf16.msra.mxu0 %v723_v36 }
 0x74b   :  { %901 = vmatprep.subr.bf16.mxu0 %v951_v0 }
 0x74e   :  { %902 = vmatpush3.bf16.msra.mxu0 %v722_v39 }
 0x74f   :  { %903 = vmatprep.subr.bf16.mxu0 %v951_v0 }
 0x752   :  { %904 = vmatpush3.bf16.msra.mxu0 %v721_v41 }
 0x753   :  { %905 = vmatprep.subr.bf16.mxu0 %v951_v0 }
 0x756   :  { %906 = vmatpush3.bf16.msra.mxu0 %v720_v44 }
 0x757   :  { %907 = vmatprep.subr.bf16.mxu0 %v951_v0 }
 0x75a   :  { %908 = vmatpush3.bf16.msra.mxu0 %v719_v58 }
 0x75b   :  { %909 = vmatprep.subr.bf16.mxu0 %v951_v0 }
 0x75e   :  { %910 = vmatpush3.bf16.msra.mxu0 %v718_v61 }
 0x7cb   :  { %v648_v45 = vpop.xlane.xlu1 %647 }
 0x7cc   :  { %v652_v48 = vmax.f32 %v648_v45, 1e-12 }
 0x7ce   :  { %947 = vrcp.f32 %v652_v48 }
 0x7cf   :  { %v651_v50 = vpop.xlane.xlu1 %650 }
 0x7d0   :  { %v653_v51 = vmax.f32 %v651_v50, 1e-12 }
 0x7d2   :  { %949 = vrcp.f32 %v653_v51 }
 0x7db   :  { %v948_v46 = vpop.eup %947 }
 0x7dc   :  { %v656_v53 = vmul.f32 %v948_v46, %v644_v25 }
 0x7df   :  { %v950_v52 = vpop.eup %949 }
 0x7e0   :  { %v657_v54 = vmul.f32 %v950_v52, %v645_v28 }
 0x7e2   :  { %v658_v55 = vpack.c.bf16 %v657_v54, %v656_v53 }
 0x7e4   :  { %892 = vmatmul.mubr.msk.bf16.vlgmr.msra.gmra.mxu1 %vm336_vm1, %v658_v55 }
 0x8a4   :  { %v696_v62 = vpop.f32.mrf.mxu1 }
 0x8a5   :  { %v705_v2 = vmul.f32 0.01, %v696_v62  ;;  %vm703_vm8 = vcmp.ge.f32.partialorder %v696_v62, 0.0 }
 0x8a6   :  { %v893_v63 = vpop.f32.mrf.mxu1 }
 0x8a7   :  { %v707_v10 = vsel %vm703_vm8, %v696_v62, %v705_v2 }
 0x8a8   :  { %v699_v3 = vpop.f32.mrf.mxu1 }
 0x8a9   :  { %vm704_vm9 = vcmp.ge.f32.partialorder %v699_v3, 0.0  ;;  %v706_v7 = vmul.f32 0.01, %v699_v3 }
 0x8aa   :  { %v894_v8 = vpop.f32.mrf.mxu1 }
 0x8ab   :  { %v708_v0 = vsel %vm704_vm9, %v699_v3, %v706_v7 }
 0x8ac   :  { %v717_v11 = vpack.c.bf16 %v708_v0, %v707_v10 }
 0x8ae   :  { %912 = vmatmul.mubr.bf16.vlgmr.msra.gmra.mxu0 %v717_v11 }
 0x96e   :  { %v766_v19 = vpop.f32.mrf.mxu0 }
 0x96f   :  { %v767_v21 = vadd.f32 %v795_v18, %v766_v19 }
 0x970   :  { %v913_v23 = vpop.f32.mrf.mxu0 }
 0x971   :  { %v773_v24 = vadd.f32 %v767_v21, %v715_v20 }
 0x972   :  { %v769_v25 = vpop.f32.mrf.mxu0 }
 0x973   :  { %vm775_vm12 = vcmp.ge.f32.partialorder %v773_v24, 0.0  ;;  %v777_v5 = vmul.f32 0.01, %v773_v24  ;;  %v770_v26 = vadd.f32 %v795_v18, %v769_v25 }
 0x974   :  { %v914_v27 = vpop.f32.mrf.mxu0 }
 0x975   :  { %v779_v28 = vsel %vm775_vm12, %v773_v24, %v777_v5  ;;  %v774_v29 = vadd.f32 %v770_v26, %v716_v9 }
 0x976   :  { %782 = vst [vmem:[%s1523_s15 + $0x8] sm:$0xff] %v779_v28 }
 0x977   :  { %vm776_vm13 = vcmp.ge.f32.partialorder %v774_v29, 0.0  ;;  %v778_v30 = vmul.f32 0.01, %v774_v29 }
 0x979   :  { %v780_v47 = vsel %vm776_vm13, %v774_v29, %v778_v30 }
 0x97a   :  { %784 = vst [vmem:[%s1523_s15 + $0x18] sm:$0xff] %v780_v47 }

</bundles_post_ra>
